<compile_context>
chip_gen: v5e
topology: v5e:2x2
jax: 0.10.0
libtpu: 0.0.40
codegen_flags: <defaults>
</compile_context>

<pallas_src>
import jax
import jax.numpy as jnp
from jax.experimental import pallas as pl
from jax.experimental.pallas import tpu as pltpu

N_CLASSES = 2
N_PAD = 128  # fc3 output padded to a full lane width (lane-dense compute/store)


def dan_kernel(x_ref, w1_ref, b1_ref, w2_ref, b2_ref, w3_ref, b3_ref, o_ref):
    """One batch tile of the DAN MLP head.

    x_ref : (TB, E)      bf16  pooled (mean over seq) embeddings
    w*    : bf16 weights stored (in_features, out_features)
    b*    : f32 biases (1, out); b3 pad columns hold -1e30
    o_ref : (TB, N_PAD)  bf16 log-probabilities (pad cols sliced off outside)
    """
    # Hoist bias loads: read each once, rely on implicit row broadcasting.
    b1 = b1_ref[...]
    b2 = b2_ref[...]
    b3 = b3_ref[...]

    # fc1 + ReLU (bf16 MXU operands, f32 accumulate; elementwise stays f32)
    h1 = jnp.dot(x_ref[...], w1_ref[...],
                 preferred_element_type=jnp.float32) + b1
    h1 = jnp.maximum(h1, 0.0)

    # fc2 + ReLU
    h2 = jnp.dot(h1.astype(jnp.bfloat16), w2_ref[...],
                 preferred_element_type=jnp.float32) + b2
    h2 = jnp.maximum(h2, 0.0)

    # fc3 (padded to 128 lane-dense columns; pad bias = -1e30)
    logits = jnp.dot(h2.astype(jnp.bfloat16), w3_ref[...],
                     preferred_element_type=jnp.float32) + b3

    # Stable log_softmax over dim=1; pad columns contribute exp(-huge) == 0.
    m = jnp.max(logits, axis=1, keepdims=True)
    z = logits - m
    lse = jnp.log(jnp.sum(jnp.exp(z), axis=1, keepdims=True))
    o_ref[...] = (z - lse).astype(o_ref.dtype)


def _pick_batch_tile(batch, requested=None, max_tile=512):
    """Pick a large batch tile (per-grid-step overhead amortization) while
    keeping >= 2 grid steps when the batch allows (v7x megacore sharding)."""
    if requested is not None:
        tile = requested
    else:
        tile = min(max_tile, batch)
        if batch >= 16 and pl.cdiv(batch, tile) < 2:
            tile = pl.cdiv(batch, 2)
    tile = max(1, min(tile, batch))
    if tile != batch:
        # Partial tiles must be sublane (8) aligned; full-extent tiles need not.
        tile = min(batch, ((tile + 7) // 8) * 8)
    return tile


def dan_forward(x_tokens, params, *, batch_tile=None):
    """x_tokens: (B, S) int32 token indices. Returns (B, 2) f32 log-probs."""
    emb, w1, b1, w2, b2, w3p, b3p = params

    # Embedding gather + mean fused in XLA glue; only (B, E) reaches the kernel.
    pooled = jnp.take(emb, x_tokens, axis=0).mean(axis=1)        # (B, E) f32
    pooled = pooled.astype(jnp.bfloat16)                         # halve DMA bytes

    B, E = pooled.shape
    H = w1.shape[1]

    tile = _pick_batch_tile(B, batch_tile)
    num_tiles = pl.cdiv(B, tile)   # no jnp.pad: Pallas masks the ragged last block

    cost = pl.CostEstimate(
        flops=2 * B * (E * H + H * H + H * N_PAD),
        transcendentals=B * (N_PAD + 1),          # exp per padded col + log per row
        bytes_accessed=(pooled.size * 2                              # bf16 in
                        + (w1.size + w2.size + w3p.size) * 2         # bf16 weights
                        + (b1.size + b2.size + b3p.size) * 4         # f32 biases
                        + B * N_PAD * 2),                            # bf16 out
    )

    act_map = lambda i: (i, 0)
    const_map = lambda i: (0, 0)          # weights/biases stay VMEM-resident
    resident = pl.Buffered(1)             # constant-index blocks: single-buffered

    grid_spec = pltpu.PrefetchScalarGridSpec(
        num_scalar_prefetch=0,
        grid=(num_tiles,),
        in_specs=[
            pl.BlockSpec((tile, E), act_map),                              # pooled
            pl.BlockSpec((E, H), const_map, pipeline_mode=resident),       # w1
            pl.BlockSpec((1, H), const_map, pipeline_mode=resident),       # b1
            pl.BlockSpec((H, H), const_map, pipeline_mode=resident),       # w2
            pl.BlockSpec((1, H), const_map, pipeline_mode=resident),       # b2
            pl.BlockSpec((H, N_PAD), const_map, pipeline_mode=resident),   # w3 (pad)
            pl.BlockSpec((1, N_PAD), const_map, pipeline_mode=resident),   # b3 (pad)
        ],
        out_specs=pl.BlockSpec((tile, N_PAD), act_map),
    )

    out = pl.pallas_call(
        dan_kernel,
        out_shape=jax.ShapeDtypeStruct((B, N_PAD), jnp.bfloat16),
        grid_spec=grid_spec,
        compiler_params=pltpu.CompilerParams(
            dimension_semantics=("parallel",),
            vmem_limit_bytes=32 * 1024 * 1024,   # ample: working set << 32 MiB
        ),
        cost_estimate=cost,
    )(pooled, w1, b1, w2, b2, w3p, b3p)

    # Drop the 126 pad logit columns; return f32 log-probs.
    return out[:, :N_CLASSES].astype(jnp.float32)


def init_params(key, vocab_size, embed_size, hidden_size):
    # For realistic GloVe configs, pick/pad embed_size and hidden_size to
    # multiples of 128 (weights only) so matmuls fill the MXU lane width.
    ks = jax.random.split(key, 7)
    emb = jax.random.normal(ks[0], (vocab_size, embed_size), jnp.float32)
    # Linear weights stored (in, out) so the kernel computes y = x @ W + b.
    w1 = (jax.random.normal(ks[1], (embed_size, hidden_size), jnp.float32) * 0.1
          ).astype(jnp.bfloat16)
    b1 = jax.random.normal(ks[2], (1, hidden_size), jnp.float32) * 0.1
    w2 = (jax.random.normal(ks[3], (hidden_size, hidden_size), jnp.float32) * 0.1
          ).astype(jnp.bfloat16)
    b2 = jax.random.normal(ks[4], (1, hidden_size), jnp.float32) * 0.1
    w3 = jax.random.normal(ks[5], (hidden_size, N_CLASSES), jnp.float32) * 0.1
    b3 = jax.random.normal(ks[6], (1, N_CLASSES), jnp.float32) * 0.1
    # Pad fc3 to 128 lane-dense columns: zero weights, -1e30 bias on pad cols
    # (-1e30 stays finite in bf16 too; exp underflows to exactly 0).
    w3p = (jnp.zeros((hidden_size, N_PAD), jnp.float32)
           .at[:, :N_CLASSES].set(w3).astype(jnp.bfloat16))
    b3p = jnp.full((1, N_PAD), -1e30, jnp.float32).at[:, :N_CLASSES].set(b3)
    return (emb, w1, b1, w2, b2, w3p, b3p)


def dan_reference(x_tokens, params):
    """Pure-JAX reference with the same mixed-precision policy (eval mode)."""
    emb, w1, b1, w2, b2, w3p, b3p = params
    pooled = jnp.take(emb, x_tokens, axis=0).mean(axis=1).astype(jnp.bfloat16)
    h1 = jnp.maximum(
        jnp.dot(pooled, w1, preferred_element_type=jnp.float32) + b1, 0.0)
    h2 = jnp.maximum(
        jnp.dot(h1.astype(jnp.bfloat16), w2,
                preferred_element_type=jnp.float32) + b2, 0.0)
    logits = jnp.dot(h2.astype(jnp.bfloat16), w3p,
                     preferred_element_type=jnp.float32) + b3p
    logp = jax.nn.log_softmax(logits[:, :N_CLASSES], axis=1)
    # Match the kernel's bf16 output-store precision.
    return logp.astype(jnp.bfloat16).astype(jnp.float32)


if __name__ == "__main__":
    # Small, self-consistent synthetic configuration (no GloVe files read).
    vocab_size = 64
    embed_size = 64
    hidden_size = 128
    batch = 32
    seq = 8

    key = jax.random.PRNGKey(0)
    k_params, k_tokens = jax.random.split(key)

    params = init_params(k_params, vocab_size, embed_size, hidden_size)
    x_tokens = jax.random.randint(k_tokens, (batch, seq), 0, vocab_size,
                                  dtype=jnp.int32)

    # Default tile picker -> tile=16, 2 grid steps (keeps both v7x TCs busy).
    out = jax.block_until_ready(dan_forward(x_tokens, params))
    ref = dan_reference(x_tokens, params)

    assert out.shape == (batch, N_CLASSES)
    assert bool(jnp.all(jnp.isfinite(out))), "non-finite log-probs"
    assert bool(jnp.allclose(out, ref, atol=1e-2, rtol=1e-2)), \
        "mismatch vs reference"

    print("KERNEL_OK")
</pallas_src>

<mosaic_0001>
module attributes {stable_mosaic.version = 11 : i64} {
  func.func @dan_kernel(%arg0: i32, %arg1: memref<16x64xbf16, #tpu.memory_space<vmem>>, %arg2: memref<64x128xbf16, #tpu.memory_space<vmem>>, %arg3: memref<1x128xf32, #tpu.memory_space<vmem>>, %arg4: memref<128x128xbf16, #tpu.memory_space<vmem>>, %arg5: memref<1x128xf32, #tpu.memory_space<vmem>>, %arg6: memref<128x128xbf16, #tpu.memory_space<vmem>>, %arg7: memref<1x128xf32, #tpu.memory_space<vmem>>, %arg8: memref<16x128xbf16, #tpu.memory_space<vmem>>) attributes {dimension_semantics = [#tpu.dimension_semantics<parallel>], iteration_bounds = array<i64: 2>, scalar_prefetch = 0 : i64, scratch_operands = 0 : i64, tpu.core_type = #tpu.core_type<tc>, window_params = [{transform_indices = @transform_0, window_bounds = array<i64: 16, 64>}, {pipeline_mode = #tpu.pipeline_mode<synchronous>, transform_indices = @transform_1, window_bounds = array<i64: 64, 128>}, {pipeline_mode = #tpu.pipeline_mode<synchronous>, transform_indices = @transform_2, window_bounds = array<i64: 1, 128>}, {pipeline_mode = #tpu.pipeline_mode<synchronous>, transform_indices = @transform_3, window_bounds = array<i64: 128, 128>}, {pipeline_mode = #tpu.pipeline_mode<synchronous>, transform_indices = @transform_4, window_bounds = array<i64: 1, 128>}, {pipeline_mode = #tpu.pipeline_mode<synchronous>, transform_indices = @transform_5, window_bounds = array<i64: 128, 128>}, {pipeline_mode = #tpu.pipeline_mode<synchronous>, transform_indices = @transform_6, window_bounds = array<i64: 1, 128>}, {transform_indices = @transform_7, window_bounds = array<i64: 16, 128>}]} {
    %c0 = arith.constant 0 : index
    %c0_0 = arith.constant 0 : index
    %0 = vector.load %arg3[%c0, %c0_0] : memref<1x128xf32, #tpu.memory_space<vmem>>, vector<1x128xf32>
    %c0_1 = arith.constant 0 : index
    %c0_2 = arith.constant 0 : index
    %1 = vector.load %arg5[%c0_1, %c0_2] : memref<1x128xf32, #tpu.memory_space<vmem>>, vector<1x128xf32>
    %c0_3 = arith.constant 0 : index
    %c0_4 = arith.constant 0 : index
    %2 = vector.load %arg7[%c0_3, %c0_4] : memref<1x128xf32, #tpu.memory_space<vmem>>, vector<1x128xf32>
    %c0_5 = arith.constant 0 : index
    %c0_6 = arith.constant 0 : index
    %3 = vector.load %arg1[%c0_5, %c0_6] : memref<16x64xbf16, #tpu.memory_space<vmem>>, vector<16x64xbf16>
    %c0_7 = arith.constant 0 : index
    %c0_8 = arith.constant 0 : index
    %4 = vector.load %arg2[%c0_7, %c0_8] : memref<64x128xbf16, #tpu.memory_space<vmem>>, vector<64x128xbf16>
    %cst = arith.constant dense<0.000000e+00> : vector<16x128xf32>
    %5 = tpu.matmul %3, %4, %cst {dimension_numbers = #tpu.dot_dimension_numbers<[1], [0], [0], [1], [0, 0, 1, 1], [], []>} : vector<16x64xbf16>, vector<64x128xbf16>, vector<16x128xf32> -> vector<16x128xf32>
    %6 = vector.broadcast %0 : vector<1x128xf32> to vector<16x128xf32>
    %7 = arith.addf %5, %6 : vector<16x128xf32>
    %cst_9 = arith.constant 0.000000e+00 : f32
    %8 = vector.broadcast %cst_9 : f32 to vector<16x128xf32>
    %9 = arith.maximumf %7, %8 : vector<16x128xf32>
    %10 = arith.truncf %9 : vector<16x128xf32> to vector<16x128xbf16>
    %c0_10 = arith.constant 0 : index
    %c0_11 = arith.constant 0 : index
    %11 = vector.load %arg4[%c0_10, %c0_11] : memref<128x128xbf16, #tpu.memory_space<vmem>>, vector<128x128xbf16>
    %cst_12 = arith.constant dense<0.000000e+00> : vector<16x128xf32>
    %12 = tpu.matmul %10, %11, %cst_12 {dimension_numbers = #tpu.dot_dimension_numbers<[1], [0], [0], [1], [0, 0, 1, 1], [], []>} : vector<16x128xbf16>, vector<128x128xbf16>, vector<16x128xf32> -> vector<16x128xf32>
    %13 = vector.broadcast %1 : vector<1x128xf32> to vector<16x128xf32>
    %14 = arith.addf %12, %13 : vector<16x128xf32>
    %cst_13 = arith.constant 0.000000e+00 : f32
    %15 = vector.broadcast %cst_13 : f32 to vector<16x128xf32>
    %16 = arith.maximumf %14, %15 : vector<16x128xf32>
    %17 = arith.truncf %16 : vector<16x128xf32> to vector<16x128xbf16>
    %c0_14 = arith.constant 0 : index
    %c0_15 = arith.constant 0 : index
    %18 = vector.load %arg6[%c0_14, %c0_15] : memref<128x128xbf16, #tpu.memory_space<vmem>>, vector<128x128xbf16>
    %cst_16 = arith.constant dense<0.000000e+00> : vector<16x128xf32>
    %19 = tpu.matmul %17, %18, %cst_16 {dimension_numbers = #tpu.dot_dimension_numbers<[1], [0], [0], [1], [0, 0, 1, 1], [], []>} : vector<16x128xbf16>, vector<128x128xbf16>, vector<16x128xf32> -> vector<16x128xf32>
    %20 = vector.broadcast %2 : vector<1x128xf32> to vector<16x128xf32>
    %21 = arith.addf %19, %20 : vector<16x128xf32>
    %cst_17 = arith.constant dense<0xFF800000> : vector<16xf32>
    %22 = vector.multi_reduction <maximumf>, %21, %cst_17 [1] : vector<16x128xf32> to vector<16xf32>
    %23 = vector.shape_cast %22 : vector<16xf32> to vector<16x1xf32>
    %24 = vector.broadcast %23 : vector<16x1xf32> to vector<16x128xf32>
    %25 = arith.subf %21, %24 : vector<16x128xf32>
    %26 = math.exp %25 : vector<16x128xf32>
    %cst_18 = arith.constant dense<0.000000e+00> : vector<16xf32>
    %27 = vector.multi_reduction <add>, %26, %cst_18 [1] : vector<16x128xf32> to vector<16xf32>
    %28 = vector.shape_cast %27 : vector<16xf32> to vector<16x1xf32>
    %29 = math.log %28 : vector<16x1xf32>
    %30 = vector.broadcast %29 : vector<16x1xf32> to vector<16x128xf32>
    %31 = arith.subf %25, %30 : vector<16x128xf32>
    %32 = arith.truncf %31 : vector<16x128xf32> to vector<16x128xbf16>
    %c0_19 = arith.constant 0 : index
    %c0_20 = arith.constant 0 : index
    %33 = vector.load %arg8[%c0_19, %c0_20] : memref<16x128xbf16, #tpu.memory_space<vmem>>, vector<16x128xbf16>
    tpu.vector_store %arg8[%c0_19, %c0_20], %32 {strides = array<i32>} : memref<16x128xbf16, #tpu.memory_space<vmem>>, vector<16x128xbf16>,
    return
  }
  func.func @transform_0(%arg0: i32) -> (i32, i32) {
    %c0_i32 = arith.constant 0 : i32
    %c0_i32_0 = arith.constant 0 : i32
    return %arg0, %c0_i32 : i32, i32
  }
  func.func @transform_1(%arg0: i32) -> (i32, i32) {
    %c0_i32 = arith.constant 0 : i32
    %c0_i32_0 = arith.constant 0 : i32
    %c0_i32_1 = arith.constant 0 : i32
    return %c0_i32, %c0_i32_0 : i32, i32
  }
  func.func @transform_2(%arg0: i32) -> (i32, i32) {
    %c0_i32 = arith.constant 0 : i32
    %c0_i32_0 = arith.constant 0 : i32
    %c0_i32_1 = arith.constant 0 : i32
    return %c0_i32, %c0_i32_0 : i32, i32
  }
  func.func @transform_3(%arg0: i32) -> (i32, i32) {
    %c0_i32 = arith.constant 0 : i32
    %c0_i32_0 = arith.constant 0 : i32
    %c0_i32_1 = arith.constant 0 : i32
    return %c0_i32, %c0_i32_0 : i32, i32
  }
  func.func @transform_4(%arg0: i32) -> (i32, i32) {
    %c0_i32 = arith.constant 0 : i32
    %c0_i32_0 = arith.constant 0 : i32
    %c0_i32_1 = arith.constant 0 : i32
    return %c0_i32, %c0_i32_0 : i32, i32
  }
  func.func @transform_5(%arg0: i32) -> (i32, i32) {
    %c0_i32 = arith.constant 0 : i32
    %c0_i32_0 = arith.constant 0 : i32
    %c0_i32_1 = arith.constant 0 : i32
    return %c0_i32, %c0_i32_0 : i32, i32
  }
  func.func @transform_6(%arg0: i32) -> (i32, i32) {
    %c0_i32 = arith.constant 0 : i32
    %c0_i32_0 = arith.constant 0 : i32
    %c0_i32_1 = arith.constant 0 : i32
    return %c0_i32, %c0_i32_0 : i32, i32
  }
  func.func @transform_7(%arg0: i32) -> (i32, i32) {
    %c0_i32 = arith.constant 0 : i32
    %c0_i32_0 = arith.constant 0 : i32
    return %arg0, %c0_i32 : i32, i32
  }
}

</mosaic_0001>

<bundles_post_ra>
// kernel: tpu_custom_call.1
= control target key start
LH: loop header
LB: loop body
LE: loop exit
PB: predicated region body
PF: predicated region fallthrough
CT: control target
= control target key end

     0   :  { %s1376_s0 = inlined_call_operand.hbm [shape: bf16[32,64], index: 0, kind: input, shape index: {}]   ;;  %s1377_s1 = inlined_call_operand.hbm [shape: bf16[64,128], index: 1, kind: input, shape index: {}]   ;;  %s1378_s2 = inlined_call_operand.vmem [shape: f32[1,128], index: 2, kind: input, shape index: {}]   ;;  %s1379_s3 = inlined_call_operand.hbm [shape: bf16[128,128], index: 3, kind: input, shape index: {}]   ;;  %s1380_s4 = inlined_call_operand.vmem [shape: f32[1,128], index: 4, kind: input, shape index: {}]   ;;  %s1381_s5 = inlined_call_operand.hbm [shape: bf16[128,128], index: 5, kind: input, shape index: {}]   ;;  %s1382_s6 = inlined_call_operand.vmem [shape: f32[1,128], index: 6, kind: input, shape index: {}]   ;;  %s1383_s7 = inlined_call_operand.hbm [shape: bf16[32,128], index: 7, kind: output, shape index: {}]  }
   0x1   :  { %1386 = sst [smem:[#allocation15_spill]] %s1377_s1 }
   0x2   :  { %12 = vsyncpa [#allocation3], 0 }
   0x3   :  { %14 = vsyncpa [#allocation3 + $0x1], 0 }
   0x4   :  { %15 = vsyncpa [#allocation6], 0 }
   0x5   :  { %16 = vsyncpa [#allocation9], 0 }
   0x6   :  { %17 = vsyncpa [#allocation4], 0 }
   0x7   :  { %19 = vsyncpa [#allocation4 + $0x1], 0  ;;  %s1193_s24 = smov 0   ;;  %s1195_s25 = smov 0  }
   0x8   :  { %s1197_s26 = smov 0   ;;  %s1199_s27 = smov 0  }
   0x9 LB: > { %s1214_s28 = sadd.s32 4294967295, %s1144_s27   ;;  %s725_s29 = sadd.s32 4294967294, %s1144_s27   ;;  %s1144_s27 = sphi %s1199_s27, %s1400_s27   ;;  %s1140_s26 = sphi %s1197_s26, %s1399_s26   ;;  %s1136_s25 = sphi %s1195_s25, %s1398_s25   ;;  %s1132_s24 = sphi %s1193_s24, %s1397_s24  }
   0xa   : > { %p45_p0 = scmp.ne.s32.totalorder %s1136_s25, %s1132_s24  ;;  %p46_p1 = scmp.eq.s32.totalorder %s1214_s28, 0 }
   0xb   : > { %p195_p2 = scmp.eq.s32.totalorder %s1214_s28, 1  ;;  %p201_p3 = scmp.eq.s32.totalorder %s725_s29, 1 }
   0xc   : > { %p1223_p4 = por %p46_p1, %p45_p0  ;;  %p726_p5 = scmp.ge.s32.totalorder %s1144_s27, 1 }
   0xd   : > { %p1228_p6 = por %p201_p3, %p45_p0  ;;  %p208_p7 = scmp.lt.s32.totalorder %s1144_s27, 3 }
   0xe   : > { %s1389_s1 = sld [smem:[#allocation15_spill]]  ;;  %s1146_s13 = smov [#allocation5]  }
   0xf   : > { %p1236_p8 = pnand %p726_p5, %p208_p7  ;;  %s221_s14 = sshll.u32 %s1146_s13, 4  ;;  %s222_s14 = int_to_ptr.vmem [resolvable:$true] %s221_s14 }
  0x10   : > { %s236_s18 = sshll.u32 %s1379_s3, 4  ;;  %s1384_s19 = smov 64   ;;  %s237_s18 = int_to_ptr.hbm [resolvable:$true] %s236_s18 }
  0x11   : > { %p874_p9 = pneg %p1236_p8  ;;  %s1385_s20 = smov 4  }
  0x12   : > { %s1149_s21 = smov [#allocation7]   ;;  %s253_s9 = sshll.u32 %s1381_s5, 4  ;;  %s254_s9 = int_to_ptr.hbm [resolvable:$true] %s253_s9 }
  0x13   : > { %p1244_p10 = pnand %p874_p9, %p46_p1  ;;  %s238_s22 = sshll.u32 %s1149_s21, 4  ;;  %s239_s22 = int_to_ptr.vmem [resolvable:$true] %s238_s22 }
  0x14   : > { %s219_s11 = sshll.u32 %s1389_s1, 4  ;;  %s1150_s10 = smov [#allocation8]   ;;  %s220_s11 = int_to_ptr.hbm [resolvable:$true] %s219_s11 }
  0x15   : > { %877 = dma.hbm_to_vmem [thread:$0]  (!%p1244_p10), %s220_s11, 512, %s222_s14, [#allocation6], %s1384_s19, %s1384_s19, %s1385_s20  }
  0x16   : > { %880 = dma.hbm_to_vmem [thread:$0]  (!%p1244_p10), %s237_s18, 1024, %s239_s22, [#allocation6], %s1384_s19, %s1384_s19, %s1385_s20  }
  0x17   : > { %s255_s11 = sshll.u32 %s1150_s10, 4  ;;  %s1266_s13 = sadd.s32 1, %s1144_s27   ;;  %s256_s11 = int_to_ptr.vmem [resolvable:$true] %s255_s11 }
  0x18   : > { %883 = dma.hbm_to_vmem [thread:$0]  (!%p1244_p10), %s254_s9, 1024, %s256_s11, [#allocation9], %s1384_s19, %s1384_s19, %s1385_s20  }
  0x19   : > { %s29_s14 = ssub.s32 %s1144_s27, %s1266_s13  ;;  %s32_s16 = sadd.s32 1, %s1140_s26 }
  0x1a   : > { %p30_p12 = scmp.eq.s32.totalorder %s29_s14, 0  ;;  %p39_p13 = scmp.ne.s32.totalorder %s1140_s26, %s1136_s25 }
  0x1b   : > { %p40_p0 = scmp.eq.s32.totalorder %s1144_s27, 0  ;;  %p895_p5 = scmp.lt.s32.totalorder %s1144_s27, 2 }
  0x1c   : > { %s1280_s17 = scalar_select %p30_p12, %s1140_s26, %s32_s16  }
  0x1d   : > { %p1284_p3 = por %p195_p2, %p39_p13  ;;  %s272_s21 = sand.u32 1, %s1140_s26  }
  0x1e   : > { %s830_s15 = sshll.u32 %s1144_s27, 3  ;;  %p41_p7 = por %p40_p0, %p39_p13 }
  0x1f   : > { %s731_s22 = sshll.u32 %s272_s21, 3  ;;  %s281_s9 = scalar_lea.hbm %s1376_s0, %s830_s15 }
  0x20   : > { %s282_s10 = sshll.u32 %s281_s9, 4  ;;  %s276_s11 = scalar_lea.vmem [#allocation2], %s731_s22  ;;  %s283_s10 = int_to_ptr.hbm [resolvable:$true] %s282_s10 }
  0x21   : > { %s284_s14 = sshll.u32 %s276_s11, 4  ;;  %p1294_p9 = pnand %p895_p5, %p41_p7  ;;  %s285_s14 = int_to_ptr.vmem [resolvable:$true] %s284_s14 }
  0x22   : > { %s273_s19 = scalar_lea.sflag [#allocation3], %s272_s21  ;;  %s1040_s20 = sshra.s32 %s283_s10, 4  ;;  %s1041_s20 = int_to_ptr.hbm [resolvable:$true] %s1040_s20 }
  0x23   : > { %s1042_s1 = scalar_lea.hbm %s1041_s20, 8  ;;  %p1044_p10 = pneg %p1294_p9 }
  0x24   : > { %p1043_p2 = scmp.ne.s32.totalorder %s1041_s20, %s1042_s1  ;;  %s1047_s22 = scalar_lea.hbm %s1376_s0, 16 }
  0x25   : > { %p1048_p0 = scmp.lt.s32.totalorder %s1041_s20, %s1376_s0  ;;  %p1049_p5 = scmp.lt.s32.totalorder %s1047_s22, %s1042_s1 }
  0x26   : > { %p1045_p12 = pnand %p1044_p10, %p1043_p2 }
  0x27   : > { %p1050_p7 = por %p1049_p5, %p1048_p0 }
  0x28   : > { %p1046_p13 = pneg %p1045_p12 }
  0x2a   : > { %p1051_p11 = pnand %p1050_p7, %p1046_p13 }
  0x2c   : > { %1054 = shalt.err (!%p1051_p11)
}
  0x2d   : > { %s1394_s21 = smov 4   ;;  %s1395_s11 = smov 64  }
  0x2e   : > { %887 = dma.hbm_to_vmem [thread:$0]  (!%p1294_p9), %s283_s10, 128, %s285_s14, %s273_s19, %s1395_s11, %s1395_s11, %s1394_s21  }
  0x2f   : > { %296 = sbr.rel (%p1236_p8) target bundleno = 755 (0x2f3), region = 48  ;;  %s1314_s15 = sand.u32 (!%p1236_p8), 1, %s1136_s25  }
  0x30   : > { %s735_s1 = sshll.u32 (!%p1236_p8), %s1314_s15, 3  ;;  %s299_s20 = scalar_lea.sflag (!%p1236_p8), [#allocation3], %s1314_s15 }
  0x31   : > { %s302_s23 = scalar_lea.vmem (!%p1236_p8), [#allocation2], %s735_s1 }
  0x34   : > { %1115 = dma.done.wait (%p1223_p4), %s299_s20, 128  }
  0x35   : > { %1117 = vsyncadd (%p1223_p4), %s299_s20, 4294967168 }
  0x36   : > { %1119 = dma.done.wait (%p46_p1), [#allocation6], 1536  }
  0x37   : > { %1121 = vsyncadd (%p46_p1), [#allocation6], 4294965760 }
  0x38   : > { %1123 = dma.done.wait (%p46_p1), [#allocation9], 1024  }
  0x39   : > { %1125 = vsyncadd (%p46_p1), [#allocation9], 4294966272  ;;  %v835_v0 = vld [vmem:[#allocation5 + $0x18] sm:$0xff]  ;;  %v834_v2 = vld [vmem:[#allocation5 + $0x10] sm:$0xff]  ;;  %vm397_vm0 = vcmask 523264   ;;  %s852_s22 = sshll.u32 %s1214_s28, 3 }
  0x3a   : > { %v843_v1 = vld [vmem:[#allocation7 + $0x38] sm:$0xff]  ;;  %405 = vmatpush.bf16.msra.mxu0 %v835_v0  ;;  %v842_v3 = vld [vmem:[#allocation7 + $0x30] sm:$0xff]  ;;  %v833_v4 = vld [vmem:[#allocation5 + $0x8] sm:$0xff]  ;;  %s619_s21 = scalar_lea.hbm %s1383_s7, %s852_s22  ;;  %s348_s11 = scalar_lea.vmem [#allocation10], %s735_s1 }
  0x3b   : > { %485 = vmatpush.bf16.msra.mxu1 %v843_v1  ;;  %v841_v5 = vld [vmem:[#allocation7 + $0x28] sm:$0xff]  ;;  %v832_v6 = vld [vmem:[#allocation5] sm:$0xff]  ;;  %v831_v8 = vld [vmem:[%s302_s23] sm:$0xff]  ;;  %s620_s20 = sshll.u32 %s348_s11, 4  ;;  %s622_s23 = sshll.u32 %s619_s21, 4  ;;  %s621_s20 = int_to_ptr.vmem [resolvable:$true] %s620_s20  ;;  %s623_s23 = int_to_ptr.hbm [resolvable:$true] %s622_s23 }
  0x3c   : > { %v840_v7 = vld [vmem:[#allocation7 + $0x20] sm:$0xff]  ;;  %v839_v9 = vld [vmem:[#allocation7 + $0x18] sm:$0xff]  ;;  %v838_v10 = vld [vmem:[#allocation7 + $0x10] sm:$0xff]  ;;  %s608_s28 = scalar_lea.sflag [#allocation4], %s1314_s15  ;;  %s1084_s30 = sshra.s32 %s623_s23, 4  ;;  %s1085_s30 = int_to_ptr.hbm [resolvable:$true] %s1084_s30 }
  0x3d   : > { %v837_v11 = vld [vmem:[#allocation7 + $0x8] sm:$0xff]  ;;  %v836_v12 = vld [vmem:[#allocation7] sm:$0xff]  ;;  %v851_v13 = vld [vmem:[#allocation8 + $0x38] sm:$0xff]  ;;  %s1086_s12 = scalar_lea.hbm %s1085_s30, 8  ;;  %s1090_s1 = scalar_lea.hbm %s1383_s7, 16 }
  0x3e   : > { %406 = vmatpush.bf16.msra.mxu0 %v834_v2  ;;  %569 = vmatpush.bf16.msra.mxu2 %v851_v13  ;;  %v850_v14 = vld [vmem:[#allocation8 + $0x30] sm:$0xff]  ;;  %v849_v15 = vld [vmem:[#allocation8 + $0x28] sm:$0xff]  ;;  %v848_v16 = vld [vmem:[#allocation8 + $0x20] sm:$0xff]  ;;  %p1087_p1 = scmp.ne.s32.totalorder %s1085_s30, %s1086_s12  ;;  %p1091_p11 = scmp.lt.s32.totalorder %s1085_s30, %s1383_s7 }
  0x3f   : > { %486 = vmatpush.bf16.msra.mxu1 %v842_v3  ;;  %v939_v18 = vld [vmem:[%s1378_s2] ss:$0 sm:$0xff]  ;;  %v847_v25 = vld [vmem:[#allocation8 + $0x18] sm:$0xff]  ;;  %v845_v27 = vld [vmem:[#allocation8 + $0x8] sm:$0xff]  ;;  %p1092_p9 = scmp.lt.s32.totalorder %s1090_s1, %s1086_s12 }
  0x40   : > { %v846_v26 = vld [vmem:[#allocation8 + $0x10] sm:$0xff]  ;;  %v844_v28 = vld [vmem:[#allocation8] sm:$0xff]  ;;  %p1088_p4 = pnand %p1087_p1, %p1284_p3 }
  0x41   : > { %v940_v30 = vld [vmem:[%s1380_s4] ss:$0 sm:$0xff]  ;;  %p1093_p2 = por %p1092_p9, %p1091_p11 }
  0x42   : > { %407 = vmatpush.bf16.msra.mxu0 %v833_v4  ;;  %570 = vmatpush.bf16.msra.mxu2 %v850_v14  ;;  %v941_v37 = vld [vmem:[%s1382_s6] ss:$0 sm:$0xff]  ;;  %p1089_p8 = pneg %p1088_p4 }
  0x43   : > { %487 = vmatpush.bf16.msra.mxu1 %v841_v5 }
  0x44   : > { %p1094_p10 = pnand %p1093_p2, %p1089_p8 }
  0x46   : > { %408 = vmatpush.bf16.msra.mxu0 %v832_v6  ;;  %571 = vmatpush.bf16.msra.mxu2 %v849_v15 }
  0x47   : > { %488 = vmatpush.bf16.msra.mxu1 %v840_v7 }
  0x49   : > { %760 = vmatmul.msk.bf16.vlgmr.msra.gmra.mxu0 %vm397_vm0, %v831_v8 }
  0x4a   : > { %572 = vmatpush.bf16.msra.mxu2 %v848_v16 }
  0x4b   : > { %489 = vmatpush.bf16.msra.mxu1 %v839_v9 }
  0x4e   : > { %573 = vmatpush.bf16.msra.mxu2 %v847_v25 }
  0x4f   : > { %490 = vmatpush.bf16.msra.mxu1 %v838_v10 }
  0x52   : > { %574 = vmatpush.bf16.msra.mxu2 %v846_v26 }
  0x53   : > { %491 = vmatpush.bf16.msra.mxu1 %v837_v11 }
  0x56   : > { %575 = vmatpush.bf16.msra.mxu2 %v845_v27 }
  0x57   : > { %492 = vmatpush.bf16.msra.mxu1 %v836_v12 }
  0x5a   : > { %576 = vmatpush.bf16.msra.mxu2 %v844_v28 }
  0xc6   : > { %v410_v17 = vpop.f32.mrf.mxu0 }
  0xc7   : > { %v411_v19 = vadd.f32 %v939_v18, %v410_v17 }
  0xc9   : > { %v415_v22 = vmax.f32 %v411_v19, 0.0 }
  0xce   : > { %v412_v20 = vpop.f32.mrf.mxu0 }
  0xcf   : > { %v413_v21 = vadd.f32 %v939_v18, %v412_v20 }
  0xd1   : > { %v416_v23 = vmax.f32 %v413_v21, 0.0 }
  0xd3   : > { %v417_v24 = vpack.c.bf16 %v416_v23, %v415_v22 }
  0xd5   : > { %493 = vmatmul.bf16.vlgmr.msra.gmra.mxu1 %v417_v24 }
 0x152   : > { %v494_v29 = vpop.f32.mrf.mxu1 }
 0x153   : > { %v495_v31 = vadd.f32 %v940_v30, %v494_v29 }
 0x155   : > { %v499_v34 = vmax.f32 %v495_v31, 0.0 }
 0x15a   : > { %v496_v32 = vpop.f32.mrf.mxu1 }
 0x15b   : > { %v497_v33 = vadd.f32 %v940_v30, %v496_v32 }
 0x15d   : > { %v500_v35 = vmax.f32 %v497_v33, 0.0 }
 0x15f   : > { %v501_v36 = vpack.c.bf16 %v500_v35, %v499_v34 }
 0x161   : > { %577 = vmatmul.bf16.vlgmr.msra.gmra.mxu2 %v501_v36 }
 0x1e4   : > { %v578_v38 = vpop.f32.mrf.mxu2 }
 0x1e5   : > { %v579_v39 = vadd.f32 %v941_v37, %v578_v38 }
 0x1e7   : > { %583 = vmax.xlane.f32.xlu0 %v579_v39 }
 0x1ec   : > { %v580_v40 = vpop.f32.mrf.mxu2 }
 0x1ed   : > { %v581_v41 = vadd.f32 %v941_v37, %v580_v40 }
 0x1ef   : > { %585 = vmax.xlane.f32.xlu0 %v581_v41 }
 0x25a   : > { %v584_v42 = vpop.xlane.xlu0 %583 }
 0x25b   : > { %v587_v43 = vsub.f32 %v579_v39, %v584_v42 }
 0x25d   : > { %v589_v44 = vmul.f32 1.442695, %v587_v43 }
 0x25f   : > { %942 = vpow2.f32 %v589_v44 }
 0x262   : > { %v586_v45 = vpop.xlane.xlu0 %585 }
 0x263   : > { %v588_v46 = vsub.f32 %v581_v41, %v586_v45 }
 0x265   : > { %v943_v47 = vpop.eup %942  ;;  %v591_v48 = vmul.f32 1.442695, %v588_v46 }
 0x266   : > { %593 = vadd.xlane.f32.xlu1 %v943_v47 }
 0x267   : > { %944 = vpow2.f32 %v591_v48 }
 0x26d   : > { %v945_v49 = vpop.eup %944 }
 0x26e   : > { %595 = vadd.xlane.f32.xlu1 %v945_v49 }
 0x2d9   : > { %v594_v50 = vpop.xlane.xlu1 %593 }
 0x2da   : > { %946 = vlog2.f32 %v594_v50 }
 0x2e0   : > { %v947_v52 = vpop.eup %946 }
 0x2e1   : > { %v596_v51 = vpop.xlane.xlu1 %595  ;;  %v598_v53 = vmul.f32 0.6931472, %v947_v52 }
 0x2e2   : > { %948 = vlog2.f32 %v596_v51 }
 0x2e3   : > { %v601_v56 = vsub.f32 %v587_v43, %v598_v53 }
 0x2e8   : > { %v949_v54 = vpop.eup %948 }
 0x2e9   : > { %v600_v55 = vmul.f32 0.6931472, %v949_v54 }
 0x2eb   : > { %v602_v57 = vsub.f32 %v588_v46, %v600_v55 }
 0x2ed   : > { %v856_v58 = vpack.c.bf16 %v602_v57, %v601_v56 }
 0x2ef   : > { %857 = vst [vmem:[%s348_s11] sm:$0xff] %v856_v58  }
 0x2f0   : > { %1097 = shalt.err (!%p1094_p10)
}
 0x2f1   : > { %s1151_s15 = smov 64   ;;  %s1152_s22 = smov 4  }
 0x2f2   : > { %872 = dma.vmem_to_hbm [thread:$0]  (%p1284_p3), %s621_s20, 128, %s623_s23, %s608_s28, %s1151_s15, %s1151_s15, %s1152_s22  }
 0x2f3 PF: > { %s637_s29 = sand.u32 1, %s1132_s24   ;;  %p1396_p12 = scmp.ge.s32.totalorder %s1144_s27, 2 }
 0x2f4   : > { %s638_s9 = scalar_lea.sflag [#allocation4], %s637_s29 }
 0x2f5   : > { %p889_p13 = pnand %p1396_p12, %p1228_p6 }
 0x2f7   : > { %p890_p0 = pneg %p889_p13 }
 0x2f9   : > { %1127 = dma.done.wait (%p890_p0), %s638_s9, 128  }
 0x2fa   : > { %1129 = vsyncadd (%p890_p0), %s638_s9, 4294967168  ;;  %p22_p5 = scmp.ge.s32.totalorder %s1266_s13, 4   ;;  %s1397_s24 = smov %s1136_s25 }
 0x2fb   : > { %s1398_s25 = smov %s1140_s26  ;;  %s1399_s26 = smov %s1280_s17 }
 0x2fc   : > { %s1400_s27 = smov %s1266_s13  ;;  %24 = sbr.rel (!%p22_p5) target bundleno = 9 (0x9), region = 105 }
 0x301   :  { %644 = vsyncpa [#allocation3], 1 }
 0x302   :  { %646 = vsyncpa [#allocation3 + $0x1], 1 }
 0x303   :  { %647 = vsyncpa [#allocation6], 1 }
 0x304   :  { %648 = vsyncpa [#allocation9], 1 }
 0x305   :  { %649 = vsyncpa [#allocation4], 1 }
 0x306   :  { %651 = vsyncpa [#allocation4 + $0x1], 1 }

</bundles_post_ra>
